<compile_context>
chip_gen: v7x
topology: tpu7x:2x2x1
jax: 0.10.0
libtpu: 0.0.40
codegen_flags: <defaults>
</compile_context>

<pallas_src>
import functools
import math

import jax
import jax.numpy as jnp
import numpy as np
from jax import lax
from jax.experimental import pallas as pl
from jax.experimental.pallas import tpu as pltpu


def _self_atten_kernel(x_ref, wq_ref, bq_ref, wv_ref, bv_ref, o_ref, *,
                       inv_sqrt_dim):
    # x_ref:  (S, D)   one batch element (leading batch dim squeezed by spec)
    # wq_ref: (dq, D)  PyTorch Linear weight layout (out, in)
    # bq_ref: (1, dq)
    # wv_ref: (D, D)
    # bv_ref: (1, D)
    # o_ref:  (S, D)
    x = x_ref[...]

    # q/v projections: contract on the last axes (x @ W^T).  No wrapper-side
    # transposes, no fused-N slicing at unaligned lane offsets.
    q = lax.dot_general(x, wq_ref[...],
                        dimension_numbers=(((1,), (1,)), ((), ())),
                        preferred_element_type=jnp.float32) + bq_ref[...]   # (S, dq)
    v = lax.dot_general(x, wv_ref[...],
                        dimension_numbers=(((1,), (1,)), ((), ())),
                        preferred_element_type=jnp.float32) + bv_ref[...]   # (S, D)

    # scores = (q / sqrt(D)) @ q^T, expressed without an explicit transpose.
    # Scale only the LHS copy; the RHS must stay unscaled since k aliases q.
    s = lax.dot_general(q * inv_sqrt_dim, q,
                        dimension_numbers=(((1,), (1,)), ((), ())),
                        preferred_element_type=jnp.float32)                 # (S, S)
    attn = jax.nn.sigmoid(s)

    o_ref[...] = jnp.dot(attn, v,
                         preferred_element_type=jnp.float32).astype(o_ref.dtype)


@jax.jit
def self_atten_pallas(x, wq, bq, wv, bv):
    """x: (B, S, D) f32.  wq: (D//s, D), bq: (D//s,), wv: (D, D), bv: (D,)."""
    B, S, D = x.shape
    dq = wq.shape[0]

    # Only wrapper-side work: metadata-only reshape of biases to 2-D rows.
    bq2 = bq.reshape(1, dq)
    bv2 = bv.reshape(1, D)

    kernel = functools.partial(_self_atten_kernel,
                               inv_sqrt_dim=1.0 / math.sqrt(float(D)))

    return pl.pallas_call(
        kernel,
        out_shape=jax.ShapeDtypeStruct((B, S, D), x.dtype),
        grid=(B,),
        in_specs=[
            # Per-batch x block; leading batch dim squeezed out of the ref.
            pl.BlockSpec((None, S, D), lambda b: (b, 0, 0)),
            # Parameters: constant block index -> VMEM-resident across steps.
            pl.BlockSpec((dq, D), lambda b: (0, 0)),
            pl.BlockSpec((1, dq), lambda b: (0, 0)),
            pl.BlockSpec((D, D), lambda b: (0, 0)),
            pl.BlockSpec((1, D), lambda b: (0, 0)),
        ],
        out_specs=pl.BlockSpec((None, S, D), lambda b: (b, 0, 0)),
        compiler_params=pltpu.CompilerParams(
            # Batch axis is independent -> shard across both TCs on v7x.
            dimension_semantics=("parallel",)),
    )(x, wq, bq2, wv, bv2)


def self_atten_ref(x, wq, bq, wv, bv):
    """Pure-JAX reference mirroring the PyTorch forward exactly."""
    D = x.shape[-1]
    q = jnp.einsum("bsd,od->bso", x, wq) + bq
    k = jnp.einsum("bsd,od->bso", x, wq) + bq   # q_linear used for k as well
    v = jnp.einsum("bsd,od->bso", x, wv) + bv
    s = jnp.einsum("bso,bto->bst", q, k)
    a = jax.nn.sigmoid(s / math.sqrt(float(D)))
    return jnp.einsum("bst,btd->bsd", a, v)


if __name__ == "__main__":
    # Small shapes consistent with the module: batch=2, seq=8, dim=32, dim_scale=2.
    B, S, D = 2, 8, 32
    dim_scale = 2
    dq = D // dim_scale

    key = jax.random.PRNGKey(0)
    kx, kwq, kbq, kwk, kbk, kwv, kbv = jax.random.split(key, 7)

    x = jax.random.normal(kx, (B, S, D), dtype=jnp.float32)

    # Deterministic synthetic parameters (PyTorch Linear shapes: W (out, in), b (out,)).
    bound = 1.0 / math.sqrt(D)
    wq = jax.random.uniform(kwq, (dq, D), minval=-bound, maxval=bound, dtype=jnp.float32)
    bq = jax.random.uniform(kbq, (dq,),   minval=-bound, maxval=bound, dtype=jnp.float32)
    # k_linear exists in __init__ but is unused in forward; initialize for fidelity.
    wk = jax.random.uniform(kwk, (dq, D), minval=-bound, maxval=bound, dtype=jnp.float32)
    bk = jax.random.uniform(kbk, (dq,),   minval=-bound, maxval=bound, dtype=jnp.float32)
    wv = jax.random.uniform(kwv, (D, D),  minval=-bound, maxval=bound, dtype=jnp.float32)
    bv = jax.random.uniform(kbv, (D,),    minval=-bound, maxval=bound, dtype=jnp.float32)

    out = jax.block_until_ready(self_atten_pallas(x, wq, bq, wv, bv))
    ref = jax.block_until_ready(self_atten_ref(x, wq, bq, wv, bv))
    np.testing.assert_allclose(np.asarray(out), np.asarray(ref), rtol=1e-5, atol=1e-5)

    # TODO(synk): the surrounding ColonNext graph (ConvNeXt encoder, depthwise
    # convs, bilinear upsampling, CNBlocks) is left to XLA; only the SelfAtten
    # core is kernelized here.
    print("KERNEL_OK")
</pallas_src>

<mosaic_0001>
module attributes {stable_mosaic.version = 11 : i64} {
  func.func @_self_atten_kernel(%arg0: i32, %arg1: memref<1x8x32xf32, #tpu.memory_space<vmem>>, %arg2: memref<16x32xf32, #tpu.memory_space<vmem>>, %arg3: memref<1x16xf32, #tpu.memory_space<vmem>>, %arg4: memref<32x32xf32, #tpu.memory_space<vmem>>, %arg5: memref<1x32xf32, #tpu.memory_space<vmem>>, %arg6: memref<1x8x32xf32, #tpu.memory_space<vmem>>) attributes {dimension_semantics = [#tpu.dimension_semantics<parallel>], iteration_bounds = array<i64: 2>, scalar_prefetch = 0 : i64, scratch_operands = 0 : i64, tpu.core_type = #tpu.core_type<tc>, window_params = [{transform_indices = @transform_0, window_bounds = array<i64: 1, 8, 32>}, {pipeline_mode = #tpu.pipeline_mode<synchronous>, transform_indices = @transform_1, window_bounds = array<i64: 16, 32>}, {pipeline_mode = #tpu.pipeline_mode<synchronous>, transform_indices = @transform_2, window_bounds = array<i64: 1, 16>}, {pipeline_mode = #tpu.pipeline_mode<synchronous>, transform_indices = @transform_3, window_bounds = array<i64: 32, 32>}, {pipeline_mode = #tpu.pipeline_mode<synchronous>, transform_indices = @transform_4, window_bounds = array<i64: 1, 32>}, {transform_indices = @transform_5, window_bounds = array<i64: 1, 8, 32>}]} {
    %c0 = arith.constant 0 : index
    %c0_0 = arith.constant 0 : index
    %c0_1 = arith.constant 0 : index
    %0 = vector.load %arg1[%c0, %c0_0, %c0_1] : memref<1x8x32xf32, #tpu.memory_space<vmem>>, vector<1x8x32xf32>
    %1 = vector.shape_cast %0 : vector<1x8x32xf32> to vector<8x32xf32>
    %c0_2 = arith.constant 0 : index
    %c0_3 = arith.constant 0 : index
    %2 = vector.load %arg2[%c0_2, %c0_3] : memref<16x32xf32, #tpu.memory_space<vmem>>, vector<16x32xf32>
    %cst = arith.constant dense<0.000000e+00> : vector<8x16xf32>
    %3 = tpu.matmul %1, %2, %cst {dimension_numbers = #tpu.dot_dimension_numbers<[1], [1], [0], [0], [0, 0, 1, 0], [], []>} : vector<8x32xf32>, vector<16x32xf32>, vector<8x16xf32> -> vector<8x16xf32>
    %c0_4 = arith.constant 0 : index
    %c0_5 = arith.constant 0 : index
    %4 = vector.load %arg3[%c0_4, %c0_5] : memref<1x16xf32, #tpu.memory_space<vmem>>, vector<1x16xf32>
    %5 = vector.broadcast %4 : vector<1x16xf32> to vector<8x16xf32>
    %6 = arith.addf %3, %5 : vector<8x16xf32>
    %c0_6 = arith.constant 0 : index
    %c0_7 = arith.constant 0 : index
    %7 = vector.load %arg4[%c0_6, %c0_7] : memref<32x32xf32, #tpu.memory_space<vmem>>, vector<32x32xf32>
    %cst_8 = arith.constant dense<0.000000e+00> : vector<8x32xf32>
    %8 = tpu.matmul %1, %7, %cst_8 {dimension_numbers = #tpu.dot_dimension_numbers<[1], [1], [0], [0], [0, 0, 1, 0], [], []>} : vector<8x32xf32>, vector<32x32xf32>, vector<8x32xf32> -> vector<8x32xf32>
    %c0_9 = arith.constant 0 : index
    %c0_10 = arith.constant 0 : index
    %9 = vector.load %arg5[%c0_9, %c0_10] : memref<1x32xf32, #tpu.memory_space<vmem>>, vector<1x32xf32>
    %10 = vector.broadcast %9 : vector<1x32xf32> to vector<8x32xf32>
    %11 = arith.addf %8, %10 : vector<8x32xf32>
    %cst_11 = arith.constant 0.176776692 : f32
    %12 = vector.broadcast %cst_11 : f32 to vector<8x16xf32>
    %13 = arith.mulf %6, %12 : vector<8x16xf32>
    %cst_12 = arith.constant dense<0.000000e+00> : vector<8x8xf32>
    %14 = tpu.matmul %13, %6, %cst_12 {dimension_numbers = #tpu.dot_dimension_numbers<[1], [1], [0], [0], [0, 0, 1, 0], [], []>} : vector<8x16xf32>, vector<8x16xf32>, vector<8x8xf32> -> vector<8x8xf32>
    %15 = arith.negf %14 : vector<8x8xf32>
    %16 = math.exp %15 : vector<8x8xf32>
    %cst_13 = arith.constant 1.000000e+00 : f32
    %17 = vector.broadcast %cst_13 : f32 to vector<8x8xf32>
    %18 = arith.addf %17, %16 : vector<8x8xf32>
    %19 = arith.divf %17, %18 : vector<8x8xf32>
    %cst_14 = arith.constant dense<0.000000e+00> : vector<8x32xf32>
    %20 = tpu.matmul %19, %11, %cst_14 {dimension_numbers = #tpu.dot_dimension_numbers<[1], [0], [0], [1], [0, 0, 1, 1], [], []>} : vector<8x8xf32>, vector<8x32xf32>, vector<8x32xf32> -> vector<8x32xf32>
    %c0_15 = arith.constant 0 : index
    %c0_16 = arith.constant 0 : index
    %c0_17 = arith.constant 0 : index
    %21 = vector.load %arg6[%c0_15, %c0_16, %c0_17] : memref<1x8x32xf32, #tpu.memory_space<vmem>>, vector<1x8x32xf32>
    %22 = vector.shape_cast %21 : vector<1x8x32xf32> to vector<8x32xf32>
    %23 = vector.shape_cast %20 : vector<8x32xf32> to vector<1x8x32xf32>
    tpu.vector_store %arg6[%c0_15, %c0_16, %c0_17], %23 {strides = array<i32>} : memref<1x8x32xf32, #tpu.memory_space<vmem>>, vector<1x8x32xf32>,
    return
  }
  func.func @transform_0(%arg0: i32) -> (i32, i32, i32) {
    %c0_i32 = arith.constant 0 : i32
    %c0_i32_0 = arith.constant 0 : i32
    %c0_i32_1 = arith.constant 0 : i32
    return %arg0, %c0_i32, %c0_i32_0 : i32, i32, i32
  }
  func.func @transform_1(%arg0: i32) -> (i32, i32) {
    %c0_i32 = arith.constant 0 : i32
    %c0_i32_0 = arith.constant 0 : i32
    %c0_i32_1 = arith.constant 0 : i32
    return %c0_i32, %c0_i32_0 : i32, i32
  }
  func.func @transform_2(%arg0: i32) -> (i32, i32) {
    %c0_i32 = arith.constant 0 : i32
    %c0_i32_0 = arith.constant 0 : i32
    %c0_i32_1 = arith.constant 0 : i32
    return %c0_i32, %c0_i32_0 : i32, i32
  }
  func.func @transform_3(%arg0: i32) -> (i32, i32) {
    %c0_i32 = arith.constant 0 : i32
    %c0_i32_0 = arith.constant 0 : i32
    %c0_i32_1 = arith.constant 0 : i32
    return %c0_i32, %c0_i32_0 : i32, i32
  }
  func.func @transform_4(%arg0: i32) -> (i32, i32) {
    %c0_i32 = arith.constant 0 : i32
    %c0_i32_0 = arith.constant 0 : i32
    %c0_i32_1 = arith.constant 0 : i32
    return %c0_i32, %c0_i32_0 : i32, i32
  }
  func.func @transform_5(%arg0: i32) -> (i32, i32, i32) {
    %c0_i32 = arith.constant 0 : i32
    %c0_i32_0 = arith.constant 0 : i32
    %c0_i32_1 = arith.constant 0 : i32
    return %arg0, %c0_i32, %c0_i32_0 : i32, i32, i32
  }
}

</mosaic_0001>

<bundles_post_ra>
// kernel: self_atten_pallas.1
= control target key start
LH: loop header
LB: loop body
LE: loop exit
PB: predicated region body
PF: predicated region fallthrough
CT: control target
= control target key end

     0   :  { %10 = vsyncpa [#allocation3], 0  ;;  %s1317_s0 = inlined_call_operand.hbm [shape: f32[2,8,32], index: 0, kind: input, shape index: {}]   ;;  %s1318_s1 = inlined_call_operand.hbm [shape: f32[16,32], index: 1, kind: input, shape index: {}]   ;;  %s1319_s2 = inlined_call_operand.vmem [shape: f32[1,16], index: 2, kind: input, shape index: {}]   ;;  %s1320_s3 = inlined_call_operand.hbm [shape: f32[32,32], index: 3, kind: input, shape index: {}]   ;;  %s1321_s4 = inlined_call_operand.vmem [shape: f32[1,32], index: 4, kind: input, shape index: {}]   ;;  %s1322_s5 = inlined_call_operand.hbm [shape: f32[2,8,32], index: 5, kind: output, shape index: {}]  }
   0x1   :  { %12 = vsyncpa [#allocation3 + $0x1], 0 }
   0x2   :  { %13 = vsyncpa [#allocation6], 0 }
   0x3   :  { %14 = vsyncpa [#allocation4], 0 }
   0x4   :  { %16 = vsyncpa [#allocation4 + $0x1], 0  ;;  %s1069_s18 = smov 0   ;;  %s1071_s19 = smov 0  }
   0x5   :  { %s1073_s20 = smov 0   ;;  %s1075_s21 = smov 0  }
   0x6 LB: > { %s1090_s22 = sadd.s32 4294967295, %s1028_s21   ;;  %s714_s23 = sadd.s32 4294967294, %s1028_s21   ;;  %s1028_s21 = sphi %s1075_s21, %s1342_s21   ;;  %s1024_s20 = sphi %s1073_s20, %s1341_s20   ;;  %s1020_s19 = sphi %s1071_s19, %s1340_s19   ;;  %s1016_s18 = sphi %s1069_s18, %s1339_s18  }
   0x7   : > { %p42_p0 = scmp.ne.s32.totalorder %s1020_s19, %s1016_s18  ;;  %p1323_p1 = scmp.eq.s32.totalorder %s1090_s22, 0 }
   0x8   : > { %p156_p3 = scmp.eq.s32.totalorder %s714_s23, 1  ;;  %p715_p5 = scmp.ge.s32.totalorder %s1028_s21, 1 }
   0x9   : > { %p1099_p4 = por %p1323_p1, %p42_p0  ;;  %p163_p7 = scmp.lt.s32.totalorder %s1028_s21, 3 }
   0xa   : > { %p1104_p6 = por %p156_p3, %p42_p0  ;;  %s1030_s27 = smov [#allocation5]  }
   0xb   : > { %s1326_s24 = scalar_select %p1099_p4, 1, 0 }
   0xc   : > { %s1327_s25 = scalar_select %p1104_p6, 1, 0 }
   0xd   : > { %p1109_p8 = pnand %p715_p5, %p163_p7  ;;  %s175_s28 = sshll.u32 %s1030_s27, 4  ;;  %s1113_s28 = int_to_ptr.vmem [resolvable:$true] %s175_s28 }
   0xe   : > { %s1031_s30 = smov [#allocation7]   ;;  %s872_s9 = scalar_lea.hbm %s1318_s1, 256 }
   0xf   : > { %p808_p9 = pneg %p1109_p8  ;;  %s191_s6 = sshll.u32 %s1031_s30, 4  ;;  %s1124_s6 = int_to_ptr.vmem [resolvable:$true] %s191_s6 }
  0x10   : > { %p873_p12 = scmp.ne.s32.totalorder %s1318_s1, %s872_s9  ;;  %p879_p5 = scmp.lt.u32.totalorder %s872_s9, %s1318_s1 }
  0x11   : > { %p1120_p11 = pnand %p808_p9, %p1323_p1 }
  0x13   : > { %p874_p13 = pneg %p1120_p11 }
  0x15   : > { %p875_p0 = pnand %p874_p13, %p873_p12 }
  0x17   : > { %p876_p3 = pneg %p875_p0 }
  0x19   : > { %p881_p7 = pnand %p879_p5, %p876_p3 }
  0x1b   : > { %884 = shalt.err (!%p881_p7)
}
  0x1c   : > { %s885_s14 = scalar_lea.vmem %s1113_s28, 256  ;;  %p893_p2 = scmp.lt.s32.totalorder %s1113_s28, %s1113_s28 }
  0x1d   : > { %p886_p9 = scmp.ne.s32.totalorder %s1113_s28, %s885_s14  ;;  %p894_p12 = scmp.lt.s32.totalorder %s885_s14, %s885_s14 }
  0x1f   : > { %p888_p10 = pnand %p886_p9, %p874_p13  ;;  %p895_p0 = por %p894_p12, %p893_p2 }
  0x21   : > { %p889_p1 = pneg %p888_p10 }
  0x23   : > { %p896_p6 = pnand %p895_p0, %p889_p1 }
  0x25   : > { %899 = shalt.err (!%p896_p6)
}
  0x26   : > { %s1032_s15 = smov 128   ;;  %s1033_s16 = smov 8  }
  0x27   : > { %811 = dma.hbm_to_vmem [thread:$0]  (!%p1120_p11), %s1318_s1, 256, %s1113_s28, [#allocation6], %s1032_s15, %s1032_s15, %s1033_s16  }
  0x28   : > { %s900_s7 = scalar_lea.hbm %s1320_s3, 512 }
  0x29   : > { %p901_p2 = scmp.ne.s32.totalorder %s1320_s3, %s900_s7  ;;  %p907_p10 = scmp.lt.u32.totalorder %s900_s7, %s1320_s3 }
  0x2b   : > { %p903_p1 = pnand %p901_p2, %p874_p13 }
  0x2d   : > { %p904_p6 = pneg %p903_p1 }
  0x2f   : > { %p909_p3 = pnand %p907_p10, %p904_p6 }
  0x31   : > { %912 = shalt.err (!%p909_p3)
}
  0x32   : > { %s913_s28 = scalar_lea.vmem %s1124_s6, 512  ;;  %p921_p12 = scmp.lt.s32.totalorder %s1124_s6, %s1124_s6 }
  0x33   : > { %p914_p5 = scmp.ne.s32.totalorder %s1124_s6, %s913_s28  ;;  %p922_p0 = scmp.lt.s32.totalorder %s913_s28, %s913_s28 }
  0x35   : > { %p916_p7 = pnand %p914_p5, %p874_p13  ;;  %p923_p2 = por %p922_p0, %p921_p12 }
  0x37   : > { %p917_p9 = pneg %p916_p7 }
  0x39   : > { %p924_p1 = pnand %p923_p2, %p917_p9 }
  0x3b   : > { %927 = shalt.err (!%p924_p1)
}
  0x3c   : > { %814 = dma.hbm_to_vmem [thread:$0]  (!%p1120_p11), %s1320_s3, 512, %s1124_s6, [#allocation6], %s1032_s15, %s1032_s15, %s1033_s16  }
  0x3d   : > { %s1179_s14 = sadd.s32 1, %s1028_s21   ;;  %s29_s29 = sadd.s32 1, %s1024_s20 }
  0x3e   : > { %s26_s17 = ssub.s32 %s1028_s21, %s1179_s14  ;;  %p36_p13 = scmp.ne.s32.totalorder %s1024_s20, %s1020_s19 }
  0x3f   : > { %p27_p6 = scmp.eq.s32.totalorder %s26_s17, 0  ;;  %p37_p10 = scmp.eq.s32.totalorder %s1028_s21, 0 }
  0x40   : > { %p1330_p3 = scmp.eq.s32.totalorder %s1090_s22, 1  ;;  %p825_p7 = scmp.lt.s32.totalorder %s1028_s21, 2 }
  0x41   : > { %s1195_s27 = scalar_select %p27_p6, %s1024_s20, %s29_s29  }
  0x42   : > { %p1189_p5 = por %p1330_p3, %p36_p13  ;;  %p38_p9 = por %p37_p10, %p36_p13 }
  0x43   : > { %s208_s30 = sand.u32 1, %s1024_s20   ;;  %s720_s6 = sshll.u32 %s1028_s21, 7 }
  0x44   : > { %s1331_s23 = scalar_select %p1189_p5, 1, 0 }
  0x45   : > { %s719_s7 = sshll.u32 %s208_s30, 3  ;;  %s1202_s8 = scalar_lea.hbm %s1317_s0, %s720_s6 }
  0x46   : > { %s212_s9 = scalar_lea.vmem [#allocation2], %s719_s7  ;;  %p1206_p11 = pnand %p825_p7, %p38_p9 }
  0x47   : > { %s219_s10 = sshll.u32 %s212_s9, 4  ;;  %s209_s28 = scalar_lea.sflag [#allocation3], %s208_s30  ;;  %s1204_s10 = int_to_ptr.vmem [resolvable:$true] %s219_s10 }
  0x48   : > { %s928_s12 = scalar_lea.hbm %s1202_s8, 128  ;;  %p930_p0 = pneg %p1206_p11 }
  0x49   : > { %p929_p12 = scmp.ne.s32.totalorder %s1202_s8, %s928_s12  ;;  %s933_s17 = scalar_lea.hbm %s1317_s0, 256 }
  0x4a   : > { %p934_p13 = scmp.lt.u32.totalorder %s1202_s8, %s1317_s0  ;;  %p935_p6 = scmp.lt.u32.totalorder %s933_s17, %s928_s12 }
  0x4b   : > { %p931_p2 = pnand %p930_p0, %p929_p12  ;;  %p937_p3 = scmp.lt.u32.totalorder %s928_s12, %s1202_s8 }
  0x4c   : > { %p936_p10 = por %p935_p6, %p934_p13 }
  0x4d   : > { %p932_p1 = pneg %p931_p2 }
  0x4e   : > { %p938_p7 = por %p937_p3, %p936_p10 }
  0x50   : > { %p939_p9 = pnand %p938_p7, %p932_p1 }
  0x52   : > { %942 = shalt.err (!%p939_p9)
}
  0x53   : > { %s943_s30 = scalar_lea.vmem %s1204_s10, 128  ;;  %s1034_s15 = smov [#allocation2]  }
  0x54   : > { %p944_p12 = scmp.ne.s32.totalorder %s1204_s10, %s943_s30  ;;  %s948_s16 = sshll.u32 %s1034_s15, 4  ;;  %s949_s16 = int_to_ptr.vmem [resolvable:$false] %s948_s16 }
  0x55   : > { %s950_s9 = scalar_lea.vmem %s949_s16, 256  ;;  %p951_p4 = scmp.lt.s32.totalorder %s1204_s10, %s949_s16 }
  0x56   : > { %p946_p2 = pnand %p944_p12, %p930_p0  ;;  %p952_p13 = scmp.lt.s32.totalorder %s950_s9, %s943_s30 }
  0x58   : > { %p947_p5 = pneg %p946_p2  ;;  %p953_p6 = por %p952_p13, %p951_p4 }
  0x5a   : > { %p954_p10 = pnand %p953_p6, %p947_p5 }
  0x5c   : > { %957 = shalt.err (!%p954_p10)
}
  0x5d   : > { %818 = dma.hbm_to_vmem [thread:$0]  (!%p1206_p11), %s1202_s8, 128, %s1204_s10, %s209_s28  }
  0x5e   : > { %228 = sbr.rel (%p1109_p8) target bundleno = 796 (0x31c), region = 40  ;;  %s1238_s12 = sand.u32 (!%p1109_p8), 1, %s1020_s19  }
  0x5f   : > { %s722_s13 = sshll.u32 (!%p1109_p8), %s1238_s12, 3  ;;  %s231_s29 = scalar_lea.sflag (!%p1109_p8), [#allocation3], %s1238_s12 }
  0x60   : > { %s234_s17 = scalar_lea.vmem (!%p1109_p8), [#allocation2], %s722_s13  ;;  %p1333_p4 = scmp.ne.s32.totalorder (!%p1109_p8), %s1326_s24, 0 }
  0x65   : > { %1003 = dma.done.wait (%p1333_p4), %s231_s29, 128  }
  0x66   : > { %1005 = vsyncadd (%p1333_p4), %s231_s29, 4294967168  ;;  %p1334_p5 = scmp.eq.s32.totalorder %s1090_s22, 0 }
  0x68   : > { %1007 = dma.done.wait (%p1334_p5), [#allocation6], 768   ;;  %p1335_p8 = pmov %p1334_p5 }
  0x69   : > { %v1035_v0 = vmov 0.0|0.0   ;;  %vm1036_vm0 = vmmov 0   ;;  %v1037_v1 = vmov 0.0   ;;  %vm279_vm1 = vcmask 261120   ;;  %v270_v2 = vld [vmem:[#allocation5] sm:$0xff]  ;;  %v271_v3 = vld [vmem:[#allocation5 + $0x8] sm:$0xff] }
  0x6a   : > { %1009 = vsyncadd (%p1335_p8), [#allocation6], 4294966528  ;;  %784 = vmatprep.subr.bf16.mxu0 %v1035_v0  ;;  %760 = vmatprep.mubr.msk.f32.mxu0 %vm1036_vm0, %v1037_v1  ;;  %v785_v4 = vpack.c.bf16 %v271_v3, %v270_v2  ;;  %v269_v5 = vld [vmem:[%s234_s17] sm:$0xff]  ;;  %v361_v9 = vld [vmem:[#allocation7 + $0x10] sm:$0xff]  ;;  %vm453_vm3 = vcmask 130048   ;;  %vm536_vm4 = vcmask 64512  }
  0x6b   : > { %788 = vmatprep.subr.bf16.mxu1 %v1035_v0  ;;  %771 = vmatprep.mubr.msk.f32.mxu1 %vm1036_vm0, %v1037_v1  ;;  %vm786_vm2 = vmpackc.low %vm279_vm1, %vm279_vm1  ;;  %v359_v6 = vld [vmem:[#allocation7] sm:$0xff]  ;;  %v360_v7 = vld [vmem:[#allocation7 + $0x8] sm:$0xff]  ;;  %s741_s11 = sshll.u32 %s1090_s22, 7  ;;  %s268_s28 = scalar_lea.vmem [#allocation8], %s722_s13 }
  0x6c   : > { %787 = vmatpush3.bf16.xpose.msk.msra.mxu0 %vm786_vm2, %v785_v4  ;;  %v789_v8 = vpack.c.bf16 %v360_v7, %v359_v6  ;;  %v362_v10 = vld [vmem:[#allocation7 + $0x18] sm:$0xff]  ;;  %v726_v12 = vld [vmem:[%s1319_s2] ss:$0 sm:$0xff]  ;;  %s625_s7 = sshll.u32 %s268_s28, 4  ;;  %s1272_s15 = scalar_lea.hbm %s1322_s5, %s741_s11  ;;  %s1274_s7 = int_to_ptr.vmem [resolvable:$true] %s625_s7 }
  0x6d   : > { %774 = vmatprep.subr.mxu0 %v1037_v1  ;;  %v793_v11 = vpack.c.bf16 %v362_v10, %v361_v9  ;;  %v730_v17 = vld [vmem:[%s1321_s4] ss:$0 sm:$0xff]  ;;  %s612_s16 = scalar_lea.sflag [#allocation4], %s1238_s12  ;;  %s958_s9 = scalar_lea.vmem %s1274_s7, 128 }
  0x6e   : > { %791 = vmatpush3.bf16.xpose.msk.msra.mxu1 %vm786_vm2, %v789_v8  ;;  %p959_p11 = scmp.ne.s32.totalorder %s1274_s7, %s958_s9  ;;  %p1336_p0 = scmp.ne.s32.totalorder %s1331_s23, 0 }
  0x6f   : > { %792 = vmatprep.subr.bf16.mxu1 %v1035_v0  ;;  %s1038_s22 = smov [#allocation8]  }
  0x70   : > { %p960_p1 = pnand %p959_p11, %p1336_p0  ;;  %s962_s13 = sshll.u32 %s1038_s22, 4  ;;  %s963_s13 = int_to_ptr.vmem [resolvable:$false] %s962_s13 }
  0x71   : > { %s964_s29 = scalar_lea.vmem %s963_s13, 256  ;;  %p965_p7 = scmp.lt.s32.totalorder %s1274_s7, %s963_s13 }
  0x72   : > { %p961_p3 = pneg %p960_p1  ;;  %p966_p9 = scmp.lt.s32.totalorder %s964_s29, %s958_s9 }
  0x73   : > { %761 = vmatmul.mubr.msk.f32.vlgmr.msra.gmra.mrb[0].mxu0 %vm279_vm1, %v269_v5 }
  0x74   : > { %776 = vmatprep.mubr.msk.f32.mxu0 %vm1036_vm0, %v1037_v1  ;;  %p967_p12 = por %p966_p9, %p965_p7 }
  0x76   : > { %795 = vmatpush3.bf16.xpose.msk.msra.mxu1 %vm786_vm2, %v793_v11  ;;  %p968_p2 = pnand %p967_p12, %p961_p3 }
  0x7d   : > { %772 = vmatmul.mubr.msk.f32.vlgmr.msra.gmra.mrb[0].mxu1 %vm279_vm1, %v269_v5 }
 0x146   : > { %v355_v13 = vpop.f32.mrb[0].mxu0 }
 0x147   : > { %v356_v14 = vadd.f32 %v726_v12, %v355_v13  ;;  %v762_v15 = vpop.f32.mrb[1].mxu0 }
 0x149   : > { %v452_v16 = vmul.f32 0.17677669, %v356_v14  ;;  %775 = vmatpush3.xpose.msk.msra.mxu0 %vm453_vm3, %v356_v14 }
 0x14a   : > { %779 = vmatprep.subr.mxu0 %v1037_v1 }
 0x14c   : > { %777 = vmatmul.mubr.msk.f32.vlgmr.msra.gmra.mrb[2].mxu0 %vm453_vm3, %v452_v16 }
 0x14d   : > { %781 = vmatprep.mubr.msk.f32.mxu0 %vm1036_vm0, %v1037_v1 }
 0x150   : > { %v448_v18 = vpop.f32.mrb[0].mxu1 }
 0x151   : > { %v449_v19 = vadd.f32 %v730_v17, %v448_v18  ;;  %v773_v20 = vpop.f32.mrb[1].mxu1 }
 0x153   : > { %780 = vmatpush3.msra.mxu0 %v449_v19 }
 0x21f   : > { %v526_v21 = vpop.f32.mrb[2].mxu0 }
 0x220   : > { %v738_v22 = vmul.f32 -1.442695, %v526_v21  ;;  %v778_v23 = vpop.f32.mrb[3].mxu0 }
 0x222   : > { %868 = vpow2.f32 %v738_v22 }
 0x22c   : > { %v869_v24 = vpop.eup %868 }
 0x22d   : > { %v533_v25 = vadd.f32 1.0, %v869_v24 }
 0x22f   : > { %870 = vrcp.f32 %v533_v25 }
 0x239   : > { %v871_v26 = vpop.eup %870 }
 0x23a   : > { %782 = vmatmul.mubr.msk.f32.vlgmr.msra.gmra.mrb[4].mxu0 %vm536_vm4, %v871_v26 }
 0x30d   : > { %v606_v27 = vpop.f32.mrb[4].mxu0 }
 0x30e   : > { %610 = vst.msk [vmem:[%s268_s28] sm:$0xff] %vm279_vm1, %v606_v27  ;;  %v783_v28 = vpop.f32.mrb[5].mxu0 }
 0x30f   : > { %971 = shalt.err (!%p968_p2)
}
 0x310   : > { %s972_s12 = scalar_lea.hbm %s1272_s15, 128  ;;  %s976_s26 = scalar_lea.hbm %s1322_s5, 256 }
 0x311   : > { %p973_p13 = scmp.ne.s32.totalorder %s1272_s15, %s972_s12  ;;  %p977_p4 = scmp.lt.u32.totalorder %s1272_s15, %s1322_s5 }
 0x312   : > { %p978_p5 = scmp.lt.u32.totalorder %s976_s26, %s972_s12  ;;  %p980_p11 = scmp.lt.u32.totalorder %s972_s12, %s1272_s15 }
 0x313   : > { %p974_p6 = pnand %p973_p13, %p1336_p0 }
 0x314   : > { %p979_p8 = por %p978_p5, %p977_p4 }
 0x315   : > { %p975_p10 = pneg %p974_p6 }
 0x316   : > { %p981_p1 = por %p980_p11, %p979_p8 }
 0x318   : > { %p982_p3 = pnand %p981_p1, %p975_p10 }
 0x31a   : > { %985 = shalt.err (!%p982_p3)
}
 0x31b   : > { %806 = dma.vmem_to_hbm [thread:$0]  (%p1336_p0), %s1274_s7, 128, %s1272_s15, %s612_s16  }
 0x31c PF: > { %s637_s11 = sand.u32 1, %s1016_s18   ;;  %p1337_p7 = scmp.ne.s32.totalorder %s1327_s25, 0 }
 0x31d   : > { %p1338_p9 = scmp.ge.s32.totalorder %s1028_s21, 2  ;;  %s638_s28 = scalar_lea.sflag [#allocation4], %s637_s11 }
 0x31f   : > { %p820_p12 = pnand %p1338_p9, %p1337_p7 }
 0x321   : > { %1011 = dma.done.wait (!%p820_p12), %s638_s28, 128  }
 0x322   : > { %1013 = vsyncadd (!%p820_p12), %s638_s28, 4294967168  ;;  %p19_p2 = scmp.ge.s32.totalorder %s1179_s14, 4   ;;  %s1339_s18 = smov %s1020_s19 }
 0x323   : > { %s1340_s19 = smov %s1024_s20  ;;  %s1341_s20 = smov %s1195_s27 }
 0x324   : > { %s1342_s21 = smov %s1179_s14  ;;  %21 = sbr.rel (!%p19_p2) target bundleno = 6 (0x6), region = 93 }
 0x32b   :  { %643 = vsyncpa [#allocation3], 1 }
 0x32c   :  { %645 = vsyncpa [#allocation3 + $0x1], 1 }
 0x32d   :  { %646 = vsyncpa [#allocation6], 1 }
 0x32e   :  { %647 = vsyncpa [#allocation4], 1 }
 0x32f   :  { %649 = vsyncpa [#allocation4 + $0x1], 1 }

</bundles_post_ra>
